<compile_context>
chip_gen: v5e
topology: v5e:2x2
jax: 0.10.0
libtpu: 0.0.40
codegen_flags: <defaults>
</compile_context>

<pallas_src>
import jax
import jax.numpy as jnp
from jax import lax
from jax.experimental import pallas as pl
from jax.experimental.pallas import tpu as pltpu


def _build_kernel(w_ref, a_ref, mask_ref, e_ref, deg_ref):
    """e = (sum_k softmax(w)_k * A_k) * mask  (bf16) ; deg[j] = sum_i e[i, j]."""
    i = pl.program_id(1)

    @pl.when(i == 0)
    def _init():
        deg_ref[...] = jnp.zeros_like(deg_ref)

    k_mats = a_ref.shape[0]
    e = w_ref[0] * a_ref[0].astype(jnp.float32)
    for k in range(1, k_mats):
        e = e + w_ref[k] * a_ref[k].astype(jnp.float32)
    e = e * mask_ref[...].astype(jnp.float32)

    deg_ref[...] += jnp.sum(e, axis=0, keepdims=True)
    e_ref[...] = e.astype(jnp.bfloat16)


def _prep_kernel(x_ref, wt_ref, d_ref, xw_ref):
    """xw_scaled = D^{-1/2} (X @ W^T), stored bf16, lane-dense padded F."""
    xw = jnp.dot(x_ref[...], wt_ref[...], preferred_element_type=jnp.float32)
    xw_ref[...] = (d_ref[...] * xw).astype(jnp.bfloat16)


def _aggregate_kernel(e_ref, diag_ref, xw_ref, d_ref, b_ref, out_ref):
    """out[j] = d[j] * sum_i e_hat[i, j] * xw_scaled[i] + b  (per column block)."""
    j = pl.program_id(0)
    i = pl.program_id(1)

    @pl.when(i == 0)
    def _init():
        out_ref[...] = jnp.zeros_like(out_ref)

    # MXU: bf16 x bf16 -> f32 accumulate; contraction over the row (source) axis.
    out_ref[...] += lax.dot_general(
        e_ref[...], xw_ref[...],
        (((0,), (0,)), ((), ())), preferred_element_type=jnp.float32)

    # Fill-value-1 self loops only touch the diagonal tile; xw_scaled already
    # carries d[i], so this adds diag_fill[j] * d[j] * xw[j].
    @pl.when(i == j)
    def _self_loops():
        out_ref[...] += diag_ref[...] * xw_ref[...].astype(jnp.float32)

    @pl.when(i == pl.num_programs(1) - 1)
    def _finalize():
        out_ref[...] = d_ref[...] * out_ref[...] + b_ref[...]


def weighted_sum_gcn(x, edge_index, a_stack, mix_weights, lin_weight, lin_bias,
                     *, tile=512):
    """x: [N, F_in] f32, edge_index: [2, E] int32, a_stack: [K, N, N],
    mix_weights: [K], lin_weight: [F_out, F_in], lin_bias: [F_out]."""
    n, f_in = x.shape
    f_out = lin_weight.shape[0]
    k_mats = a_stack.shape[0]

    tile = min(tile, n)                      # 512-wide tiles for large graphs
    assert n % tile == 0, "N must be a multiple of the tile size"
    num_blk = n // tile
    f_pad = max(128, ((f_out + 127) // 128) * 128)   # lane-dense output width
    vmem_limit = 32 * 1024 * 1024

    # ---- tiny wrapper-side glue (O(K), O(N), O(E)) --------------------------
    w = jax.nn.softmax(mix_weights.astype(jnp.float32), axis=0)          # (K,)
    # TODO(synk): the dense scatter of edge_index has no clean Pallas equivalent;
    # if edge_index is static across calls, precompute mask_i8 once outside the
    # hot path instead of rebuilding it per call.
    mask_i8 = (jnp.zeros((n, n), jnp.int8)
               .at[edge_index[0], edge_index[1]].set(1))
    diag_fill = 1.0 - jnp.diag(mask_i8).astype(jnp.float32)              # (N,)
    a_bf16 = a_stack.astype(jnp.bfloat16)                                # (K,N,N)
    x_f32 = x.astype(jnp.float32)
    wt_pad = (jnp.zeros((f_in, f_pad), jnp.float32)
              .at[:, :f_out].set(lin_weight.T.astype(jnp.float32)))
    b_pad = (jnp.zeros((1, f_pad), jnp.float32)
             .at[:, :f_out].set(lin_bias.astype(jnp.float32)))

    grid2 = (num_blk, num_blk)     # (j: output/column blocks, i: row/reduction)
    sem2 = ("parallel", "arbitrary")

    # ---- pass 1: masked weighted adjacency (bf16) + its column degrees ------
    e_bf16, deg_row = pl.pallas_call(
        _build_kernel,
        out_shape=(jax.ShapeDtypeStruct((n, n), jnp.bfloat16),
                   jax.ShapeDtypeStruct((1, n), jnp.float32)),
        grid=grid2,
        in_specs=[
            pl.BlockSpec(memory_space=pltpu.MemorySpace.SMEM),            # w (K,)
            pl.BlockSpec((k_mats, tile, tile), lambda j, i: (0, i, j)),   # A  bf16
            pl.BlockSpec((tile, tile), lambda j, i: (i, j)),              # mask i8
        ],
        out_specs=(
            pl.BlockSpec((tile, tile), lambda j, i: (i, j)),              # e  bf16
            pl.BlockSpec((1, tile), lambda j, i: (0, j)),                 # deg acc
        ),
        compiler_params=pltpu.CompilerParams(
            dimension_semantics=sem2, vmem_limit_bytes=vmem_limit),
    )(w, a_bf16, mask_i8)

    deg = deg_row.reshape(n) + diag_fill            # add missing self loops
    d = jnp.where(deg > 0, lax.rsqrt(deg), 0.0)     # keep rsqrt in f32
    d_col = d.reshape(n, 1)
    diag_col = diag_fill.reshape(n, 1)

    # ---- pass 2: xw_scaled = D^{-1/2} (X W^T), bf16, lane-dense F -----------
    xw_scaled = pl.pallas_call(
        _prep_kernel,
        out_shape=jax.ShapeDtypeStruct((n, f_pad), jnp.bfloat16),
        grid=(num_blk,),
        in_specs=[
            pl.BlockSpec((tile, f_in), lambda i: (i, 0)),                 # X
            pl.BlockSpec((f_in, f_pad), lambda i: (0, 0)),                # W^T pad
            pl.BlockSpec((tile, 1), lambda i: (i, 0)),                    # d
        ],
        out_specs=pl.BlockSpec((tile, f_pad), lambda i: (i, 0)),
        compiler_params=pltpu.CompilerParams(
            dimension_semantics=("parallel",), vmem_limit_bytes=vmem_limit),
    )(x_f32, wt_pad, d_col)

    # ---- pass 3: tiled aggregation, D^{-1/2} folded into the N x F tensors --
    out_pad = pl.pallas_call(
        _aggregate_kernel,
        out_shape=jax.ShapeDtypeStruct((n, f_pad), jnp.float32),
        grid=grid2,
        in_specs=[
            pl.BlockSpec((tile, tile), lambda j, i: (i, j)),              # e  bf16
            pl.BlockSpec((tile, 1), lambda j, i: (j, 0)),                 # diag fill
            pl.BlockSpec((tile, f_pad), lambda j, i: (i, 0)),             # xw_scaled
            pl.BlockSpec((tile, 1), lambda j, i: (j, 0)),                 # d
            pl.BlockSpec((1, f_pad), lambda j, i: (0, 0)),                # bias
        ],
        out_specs=pl.BlockSpec((tile, f_pad), lambda j, i: (j, 0)),
        compiler_params=pltpu.CompilerParams(
            dimension_semantics=sem2, vmem_limit_bytes=vmem_limit),
    )(e_bf16, diag_col, xw_scaled, d_col, b_pad)

    return out_pad[:, :f_out]


def reference(x, edge_index, a_stack, mix_weights, lin_weight, lin_bias):
    """Pure-JAX f32 reference replicating PyG GCNConv with dense adjacency."""
    n = x.shape[0]
    w = jax.nn.softmax(mix_weights, axis=0)
    a_meta = jnp.einsum('k,kij->ij', w, a_stack)
    mask = jnp.zeros((n, n), jnp.float32).at[edge_index[0], edge_index[1]].set(1.0)
    e = a_meta * mask
    diag_add = 1.0 - jnp.diag(mask)
    e_hat = e + jnp.diag(diag_add)
    deg = e_hat.sum(axis=0)
    d = jnp.where(deg > 0, 1.0 / jnp.sqrt(deg), 0.0)
    a_norm = d[:, None] * e_hat * d[None, :]
    xw = x @ lin_weight.T
    return a_norm.T @ xw + lin_bias[None, :]


if __name__ == "__main__":
    N, F_IN, F_OUT, K = 256, 16, 8, 3

    key = jax.random.PRNGKey(0)
    k_x, k_a, k_w, k_b = jax.random.split(key, 4)

    x = jax.random.normal(k_x, (N, F_IN), jnp.float32)
    a_stack = jax.random.uniform(k_a, (K, N, N), jnp.float32)

    # deterministic edge set: (i -> (i+k) mod N) for k=1..4 -> no duplicates,
    # no pre-existing self loops
    src = jnp.concatenate([jnp.arange(N, dtype=jnp.int32) for _ in range(4)])
    dst = jnp.concatenate([(jnp.arange(N, dtype=jnp.int32) + k) % N
                           for k in range(1, 5)])
    edge_index = jnp.stack([src, dst], axis=0)

    # module parameters (__init__ sets mixture weights = 1/num_matrices)
    mix_weights = jnp.ones((K,), jnp.float32) / K
    lin_weight = 0.1 * jax.random.normal(k_w, (F_OUT, F_IN), jnp.float32)
    lin_bias = 0.1 * jax.random.normal(k_b, (F_OUT,), jnp.float32)

    # tile=128 -> 2x2 grid, exercising the reduction sweep + diagonal-tile path.
    out = weighted_sum_gcn(x, edge_index, a_stack, mix_weights, lin_weight,
                           lin_bias, tile=128)
    out = jax.block_until_ready(out)

    ref = reference(x, edge_index, a_stack, mix_weights, lin_weight, lin_bias)
    assert out.shape == (N, F_OUT)
    # bf16 adjacency + bf16 MXU inputs (f32 accumulate): compare at
    # bf16-appropriate tolerance against the f32 reference.
    assert jnp.allclose(out, ref, atol=3e-2, rtol=3e-2), "mismatch vs JAX reference"

    print("KERNEL_OK")
</pallas_src>

<mosaic_0001>
module attributes {stable_mosaic.version = 11 : i64} {
  func.func @_build_kernel(%arg0: i32, %arg1: i32, %arg2: memref<3xf32, #tpu.memory_space<smem>>, %arg3: memref<3x128x128xbf16, #tpu.memory_space<vmem>>, %arg4: memref<128x128xi8, #tpu.memory_space<vmem>>, %arg5: memref<128x128xbf16, #tpu.memory_space<vmem>>, %arg6: memref<1x128xf32, #tpu.memory_space<vmem>>) attributes {dimension_semantics = [#tpu.dimension_semantics<parallel>, #tpu.dimension_semantics<arbitrary>], iteration_bounds = array<i64: 2, 2>, scalar_prefetch = 0 : i64, scratch_operands = 0 : i64, tpu.core_type = #tpu.core_type<tc>, window_params = [{transform_indices = @transform_0, window_bounds = array<i64: 3>}, {transform_indices = @transform_1, window_bounds = array<i64: 3, 128, 128>}, {transform_indices = @transform_2, window_bounds = array<i64: 128, 128>}, {transform_indices = @transform_3, window_bounds = array<i64: 128, 128>}, {transform_indices = @transform_4, window_bounds = array<i64: 1, 128>}]} {
    %c0_i32 = arith.constant 0 : i32
    %0 = arith.cmpi eq, %arg1, %c0_i32 : i32
    %1 = arith.extui %0 : i1 to i32
    %c0_i32_0 = arith.constant 0 : i32
    %2 = arith.cmpi ne, %1, %c0_i32_0 : i32
    scf.if %2 {
      %cst_18 = arith.constant 0.000000e+00 : f32
      %33 = vector.broadcast %cst_18 : f32 to vector<1x128xf32>
      %c0_19 = arith.constant 0 : index
      %c0_20 = arith.constant 0 : index
      %34 = vector.load %arg6[%c0_19, %c0_20] : memref<1x128xf32, #tpu.memory_space<vmem>>, vector<1x128xf32>
      tpu.vector_store %arg6[%c0_19, %c0_20], %33 {strides = array<i32>} : memref<1x128xf32, #tpu.memory_space<vmem>>, vector<1x128xf32>,
    } else {
    }
    %c0 = arith.constant 0 : index
    %3 = memref.load %arg2[%c0] : memref<3xf32, #tpu.memory_space<smem>>
    %c0_1 = arith.constant 0 : index
    %c0_2 = arith.constant 0 : index
    %c0_3 = arith.constant 0 : index
    %4 = vector.load %arg3[%c0_1, %c0_2, %c0_3] : memref<3x128x128xbf16, #tpu.memory_space<vmem>>, vector<1x128x128xbf16>
    %5 = vector.shape_cast %4 : vector<1x128x128xbf16> to vector<128x128xbf16>
    %6 = arith.extf %5 : vector<128x128xbf16> to vector<128x128xf32>
    %7 = vector.broadcast %3 : f32 to vector<128x128xf32>
    %8 = arith.mulf %7, %6 : vector<128x128xf32>
    %c1 = arith.constant 1 : index
    %9 = memref.load %arg2[%c1] : memref<3xf32, #tpu.memory_space<smem>>
    %c1_4 = arith.constant 1 : index
    %c0_5 = arith.constant 0 : index
    %c0_6 = arith.constant 0 : index
    %10 = vector.load %arg3[%c1_4, %c0_5, %c0_6] : memref<3x128x128xbf16, #tpu.memory_space<vmem>>, vector<1x128x128xbf16>
    %11 = vector.shape_cast %10 : vector<1x128x128xbf16> to vector<128x128xbf16>
    %12 = arith.extf %11 : vector<128x128xbf16> to vector<128x128xf32>
    %13 = vector.broadcast %9 : f32 to vector<128x128xf32>
    %14 = arith.mulf %13, %12 : vector<128x128xf32>
    %15 = arith.addf %8, %14 : vector<128x128xf32>
    %c2 = arith.constant 2 : index
    %16 = memref.load %arg2[%c2] : memref<3xf32, #tpu.memory_space<smem>>
    %c2_7 = arith.constant 2 : index
    %c0_8 = arith.constant 0 : index
    %c0_9 = arith.constant 0 : index
    %17 = vector.load %arg3[%c2_7, %c0_8, %c0_9] : memref<3x128x128xbf16, #tpu.memory_space<vmem>>, vector<1x128x128xbf16>
    %18 = vector.shape_cast %17 : vector<1x128x128xbf16> to vector<128x128xbf16>
    %19 = arith.extf %18 : vector<128x128xbf16> to vector<128x128xf32>
    %20 = vector.broadcast %16 : f32 to vector<128x128xf32>
    %21 = arith.mulf %20, %19 : vector<128x128xf32>
    %22 = arith.addf %15, %21 : vector<128x128xf32>
    %c0_10 = arith.constant 0 : index
    %c0_11 = arith.constant 0 : index
    %23 = vector.load %arg4[%c0_10, %c0_11] : memref<128x128xi8, #tpu.memory_space<vmem>>, vector<128x128xi8>
    %24 = arith.sitofp %23 : vector<128x128xi8> to vector<128x128xf32>
    %25 = arith.mulf %22, %24 : vector<128x128xf32>
    %c0_12 = arith.constant 0 : index
    %c0_13 = arith.constant 0 : index
    %26 = vector.load %arg6[%c0_12, %c0_13] : memref<1x128xf32, #tpu.memory_space<vmem>>, vector<1x128xf32>
    %cst = arith.constant dense<0.000000e+00> : vector<128xf32>
    %27 = vector.multi_reduction <add>, %25, %cst [0] : vector<128x128xf32> to vector<128xf32>
    %28 = vector.shape_cast %27 : vector<128xf32> to vector<1x128xf32>
    %29 = arith.addf %26, %28 : vector<1x128xf32>
    %c0_14 = arith.constant 0 : index
    %c0_15 = arith.constant 0 : index
    %30 = vector.load %arg6[%c0_14, %c0_15] : memref<1x128xf32, #tpu.memory_space<vmem>>, vector<1x128xf32>
    tpu.vector_store %arg6[%c0_14, %c0_15], %29 {strides = array<i32>} : memref<1x128xf32, #tpu.memory_space<vmem>>, vector<1x128xf32>,
    %31 = arith.truncf %25 : vector<128x128xf32> to vector<128x128xbf16>
    %c0_16 = arith.constant 0 : index
    %c0_17 = arith.constant 0 : index
    %32 = vector.load %arg5[%c0_16, %c0_17] : memref<128x128xbf16, #tpu.memory_space<vmem>>, vector<128x128xbf16>
    tpu.vector_store %arg5[%c0_16, %c0_17], %31 {strides = array<i32>} : memref<128x128xbf16, #tpu.memory_space<vmem>>, vector<128x128xbf16>,
    return
  }
  func.func @transform_0(%arg0: i32, %arg1: i32) -> i32 {
    %c0_i32 = arith.constant 0 : i32
    %c0_i32_0 = arith.constant 0 : i32
    return %c0_i32 : i32
  }
  func.func @transform_1(%arg0: i32, %arg1: i32) -> (i32, i32, i32) {
    %c0_i32 = arith.constant 0 : i32
    %c0_i32_0 = arith.constant 0 : i32
    return %c0_i32, %arg1, %arg0 : i32, i32, i32
  }
  func.func @transform_2(%arg0: i32, %arg1: i32) -> (i32, i32) {
    %c0_i32 = arith.constant 0 : i32
    return %arg1, %arg0 : i32, i32
  }
  func.func @transform_3(%arg0: i32, %arg1: i32) -> (i32, i32) {
    %c0_i32 = arith.constant 0 : i32
    return %arg1, %arg0 : i32, i32
  }
  func.func @transform_4(%arg0: i32, %arg1: i32) -> (i32, i32) {
    %c0_i32 = arith.constant 0 : i32
    %c0_i32_0 = arith.constant 0 : i32
    return %c0_i32, %arg0 : i32, i32
  }
}

</mosaic_0001>

<bundles_post_ra>
// kernel: tpu_custom_call.1
= control target key start
LH: loop header
LB: loop body
LE: loop exit
PB: predicated region body
PF: predicated region fallthrough
CT: control target
= control target key end

     0   :  { %s1820_s0 = inlined_call_operand.hbm [shape: f32[3], index: 0, kind: input, shape index: {}]   ;;  %s1821_s1 = inlined_call_operand.hbm [shape: bf16[3,256,256], index: 1, kind: input, shape index: {}]   ;;  %s1822_s2 = inlined_call_operand.hbm [shape: s8[256,256], index: 2, kind: input, shape index: {}]   ;;  %s1823_s3 = inlined_call_operand.hbm [shape: bf16[256,256], index: 3, kind: output, shape index: {0}]   ;;  %s1824_s4 = inlined_call_operand.hbm [shape: f32[1,256], index: 4, kind: output, shape index: {1}]  }
   0x1   :  { %1839 = sst [smem:[#allocation32_spill]] %s1820_s0 }
   0x2   :  { %1840 = sst [smem:[#allocation33_spill]] %s1821_s1 }
   0x3   :  { %10 = vsyncpa [#allocation5], 0 }
   0x4   :  { %11 = vsyncpa [#allocation3], 0 }
   0x5   :  { %13 = vsyncpa [#allocation3 + $0x1], 0 }
   0x6   :  { %14 = vsyncpa [#allocation8], 0 }
   0x7   :  { %16 = vsyncpa [#allocation8 + $0x1], 0 }
   0x8   :  { %17 = vsyncpa [#allocation4], 0 }
   0x9   :  { %19 = vsyncpa [#allocation4 + $0x1], 0 }
   0xa   :  { %20 = vsyncpa [#allocation11], 0 }
   0xb   :  { %22 = vsyncpa [#allocation11 + $0x1], 0  ;;  %s1432_s15 = smov 0   ;;  %s1434_s16 = smov 0  }
   0xc   :  { %s1436_s17 = smov 0   ;;  %s1438_s18 = smov 0  }
   0xd   :  { %s1440_s19 = smov 0   ;;  %s1442_s20 = smov 0  }
   0xe   :  { %s1444_s21 = smov 0   ;;  %s1446_s22 = smov 0  }
   0xf   :  { %s1448_s23 = smov 0   ;;  %s1450_s24 = smov 0  }
  0x10   :  { %s1452_s25 = smov 0  }
  0x11 LB: > { %1841 = sst [smem:[#allocation20_spill]] %s1350_s15  ;;  %s819_s26 = sadd.s32 4294967295, %s1390_s25   ;;  %s1390_s25 = sphi %s1452_s25, %s28_s25   ;;  %s1386_s24 = sphi %s1450_s24, %s1887_s24   ;;  %s1382_s23 = sphi %s1448_s23, %s1886_s23   ;;  %s1378_s22 = sphi %s1446_s22, %s1885_s22   ;;  %s1374_s21 = sphi %s1444_s21, %s1884_s21   ;;  %s1370_s20 = sphi %s1442_s20, %s1876_s20   ;;  %s1366_s19 = sphi %s1440_s19, %s1883_s19   ;;  %s1362_s18 = sphi %s1438_s18, %s1882_s18   ;;  %s1358_s17 = sphi %s1436_s17, %s1881_s17   ;;  %s1354_s16 = sphi %s1434_s16, %s1880_s16   ;;  %s1350_s15 = sphi %s1432_s15, %s1879_s15  }
  0x12   : > { %1842 = sst [smem:[#allocation21_spill]] %s1358_s17  ;;  %s820_s27 = sadd.s32 4294967294, %s1390_s25  }
  0x13   : > { %1843 = sst [smem:[#allocation22_spill]] %s1362_s18  ;;  %s37_s28 = sadd.s32 1, %s1382_s23 }
  0x14   : > { %1844 = sst [smem:[#allocation23_spill]] %s1370_s20  ;;  %s40_s29 = sadd.s32 1, %s1386_s24 }
  0x15   : > { %1845 = sst [smem:[#allocation24_spill]] %s1390_s25  ;;  %p38_p0 = scmp.ge.s32.totalorder %s37_s28, 2 }
  0x16   : > { %s70_s30 = sadd.s32 1, %s1370_s20  ;;  %p77_p1 = scmp.ne.s32.totalorder %s1370_s20, %s1366_s19 }
  0x17   : > { %p78_p2 = scmp.eq.s32.totalorder %s1390_s25, 0  ;;  %s1889_s28 = smov (%p38_p0, %s37_s28), 0 }
  0x18   : > { %1846 = sst [smem:[#allocation25_spill]] %s1889_s28  ;;  %s1891_s29 = smov (!%p38_p0, %s40_s29), %s1386_s24 }
  0x19   : > { %s65_s5 = ssub.s32 %s1382_s23, %s1889_s28  ;;  %p1500_p3 = por %p78_p2, %p77_p1 }
  0x1a   : > { %p42_p4 = scmp.ge.s32.totalorder %s1891_s29, 2  ;;  %p83_p5 = scmp.ne.s32.totalorder %s1366_s19, %s1362_s18 }
  0x1b   : > { %p1506_p6 = scmp.eq.s32.totalorder %s819_s26, 0  ;;  %p1510_p7 = scmp.eq.s32.totalorder %s819_s26, 3 }
  0x1c   : > { %s1893_s29 = smov (%p42_p4, %s1891_s29), 0  ;;  %p1530_p10 = scmp.eq.s32.totalorder %s820_s27, 3 }
  0x1d   : > { %1850 = sst [smem:[#allocation26_spill]] %s1893_s29  ;;  %p1518_p8 = por %p1506_p6, %p83_p5 }
  0x1e   : > { %p1524_p9 = por %p1510_p7, %p77_p1  ;;  %s66_s11 = ssub.s32 %s1386_s24, %s1893_s29 }
  0x1f   : > { %s1851_s9 = scalar_select %p1518_p8, 1, 0 }
  0x20   : > { %s1852_s10 = scalar_select %p1524_p9, 1, 0 }
  0x21   : > { %s67_s13 = sor.u32 %s66_s11, %s65_s5  ;;  %p150_p11 = scmp.eq.s32.totalorder %s66_s11, 0 }
  0x22   : > { %p68_p12 = scmp.eq.s32.totalorder %s67_s13, 0  ;;  %p1536_p13 = por %p1530_p10, %p83_p5 }
  0x23   : > { %s152_s26 = sadd.s32 1, %s1358_s17  ;;  %p162_p0 = scmp.ne.s32.totalorder %s1358_s17, %s1354_s16 }
  0x24   : > { %s1854_s14 = scalar_select %p1536_p13, 1, 0 }
  0x25   : > { %s1544_s28 = scalar_select %p68_p12, %s1370_s20, %s70_s30  }
  0x26   : > { %1855 = sst [smem:[#allocation27_spill]] %s1854_s14  ;;  %p1551_p1 = por %p162_p0, %p1510_p7 }
  0x27   : > { %1856 = sst [smem:[#allocation28_spill]] %s1544_s28  ;;  %p168_p2 = scmp.ne.s32.totalorder %s1354_s16, %s1350_s15 }
  0x28   : > { %s1547_s29 = scalar_select %p150_p11, %s1358_s17, %s152_s26  }
  0x29   : > { %s1858_s27 = scalar_select %p1551_p1, 1, 0 }
  0x2a   : > { %1857 = sst [smem:[#allocation29_spill]] %s1547_s29  ;;  %p821_p4 = scmp.ge.s32.totalorder %s1390_s25, 1 }
  0x2b   : > { %1859 = sst [smem:[#allocation30_spill]] %s1858_s27  ;;  %p176_p9 = scmp.lt.s32.totalorder %s1390_s25, 5 }
  0x2c   : > { %p1561_p8 = por %p168_p2, %p1530_p10  ;;  %s1863_s0 = sld [smem:[#allocation32_spill]] }
  0x2d   : > { %p1565_p5 = pnand %p821_p4, %p176_p9  ;;  %s1392_s26 = smov [#allocation2]  }
  0x2e   : > { %s1860_s5 = scalar_select %p1561_p8, 1, 0 }
  0x2f   : > { %p1068_p7 = pneg %p1565_p5  ;;  %p823_p10 = scmp.ge.s32.totalorder %s1390_s25, 4 }
  0x30   : > { %1861 = sst [smem:[#allocation31_spill]] %s1860_s5 }
  0x31   : > { %p1069_p11 = pnand %p1068_p7, %p1506_p6  ;;  %195 = sbr.rel (%p823_p10) target bundleno = 77 (0x4d), region = 20 }
  0x32   : > { %s188_s8 = sshll.u32 %s1863_s0, 4  ;;  %s189_s8 = int_to_ptr.hbm [resolvable:$true] %s188_s8 }
  0x33   : > { %1071 = dma.hbm_to_smem (!%p1069_p11), %s189_s8, 16, %s1392_s26, [#allocation5]  }
  0x36   : > { %s1578_s12 = sand.u32 1, %s1370_s20   ;;  %s878_s30 = sshll.u32 %s1382_s23, 5 }
  0x37   : > { %s1047_s13 = smul.u32 192, %s1578_s12  ;;  %s208_s0 = sadd.s32 %s1386_s24, %s878_s30 }
  0x38   : > { %s826_s28 = sshll.u32 %s208_s0, 2  ;;  %s1864_s1 = sld [smem:[#allocation33_spill]] }
  0x39   : > { %s203_s26 = scalar_lea.vmem [#allocation6], %s1047_s13  ;;  %s1393_s18 = smov 4096  }
  0x3a   : > { %s225_s5 = sshll.u32 %s203_s26, 4  ;;  %1052 = sst [smem:[#allocation13]] (%p1500_p3), %s1393_s18  ;;  %s226_s5 = int_to_ptr.vmem [resolvable:$true] %s225_s5 }
  0x3b   : > { %s1051_s15 = scalar_select %p1500_p3, [#allocation0], [#allocation14] }
  0x3c   : > { %s1394_s0 = smov 1024   ;;  %s1395_s17 = smov 16  }
  0x3d   : > { %s215_s20 = sld [smem:[%s1051_s15]]   ;;  %s1397_s29 = smov 64  }
  0x3e   : > { %s210_s8 = scalar_lea.hbm %s1864_s1, %s826_s28  ;;  %1053 = sst [smem:[#allocation13 + $0x1]] (%p1500_p3), %s1394_s0 }
  0x3f   : > { %s223_s14 = sshll.u32 %s210_s8, 4  ;;  %1054 = sst [smem:[#allocation13 + $0x2]] (%p1500_p3), %s1395_s17  ;;  %s224_s14 = int_to_ptr.hbm [resolvable:$true] %s223_s14 }
  0x40   : > { %s1396_s28 = smov 128   ;;  %1056 = sst [smem:[#allocation13 + $0x4]] (%p1500_p3), %s1397_s29 }
  0x41   : > { %1055 = sst [smem:[#allocation13 + $0x3]] (%p1500_p3), %s1396_s28  ;;  %s1398_s15 = smov 4  }
  0x42   : > { %1057 = sst [smem:[#allocation13 + $0x5]] (%p1500_p3), %s1398_s15  ;;  %s200_s8 = scalar_lea.sflag [#allocation3], %s1578_s12 }
  0x43   : > { %s827_s30 = sshll.u32 %s215_s20, 26  ;;  %s1399_s26 = smov [#allocation12]  }
  0x44   : > { %s828_s13 = sadd.s32 134217728, %s827_s30  ;;  %s829_s18 = sshll.u32 %s1578_s12, 5 }
  0x45   : > { %1058 = dma.general (%p1500_p3), %s224_s14, 3072, %s226_s5, %s200_s8, %s1399_s26, [#allocation13], %s828_s13, 0  }
  0x46   : > { %s879_s0 = sshll.u32 %s1382_s23, 3  ;;  %s252_s28 = scalar_lea.vmem [#allocation7], %s829_s18 }
  0x47   : > { %s257_s17 = sadd.s32 %s1386_s24, %s879_s0  ;;  %s262_s1 = sshll.u32 %s252_s28, 4  ;;  %s263_s1 = int_to_ptr.vmem [resolvable:$true] %s262_s1 }
  0x48   : > { %s832_s29 = sshll.u32 %s257_s17, 3  ;;  %s249_s27 = scalar_lea.sflag [#allocation8], %s1578_s12 }
  0x49   : > { %s259_s30 = scalar_lea.hbm %s1822_s2, %s832_s29  ;;  %s1400_s14 = smov 256  }
  0x4a   : > { %s260_s15 = sshll.u32 %s259_s30, 4  ;;  %s1401_s5 = smov 128   ;;  %s261_s15 = int_to_ptr.hbm [resolvable:$true] %s260_s15 }
  0x4b   : > { %s1402_s13 = smov 8  }
  0x4c   : > { %1059 = dma.hbm_to_vmem [thread:$0]  (%p1500_p3), %s261_s15, 512, %s263_s1, %s249_s27, %s1400_s14, %s1401_s5, %s1402_s13  }
  0x4d PF: > { %274 = sbr.rel (%p1565_p5) target bundleno = 187 (0xbb), region = 32 }
  0x52   : > { %1329 = dma.done.wait (%p1506_p6), [#allocation5], 16  }
  0x53   : > { %1331 = vsyncadd (%p1506_p6), [#allocation5], 4294967280  ;;  %s1619_s25 = sand.u32 1, %s1366_s19   ;;  %p1865_p3 = scmp.ne.s32.totalorder %s1851_s9, 0 }
  0x54   : > { %s1048_s12 = smul.u32 192, %s1619_s25  ;;  %s282_s8 = scalar_lea.sflag [#allocation3], %s1619_s25 }
  0x56   : > { %s1623_s6 = scalar_lea.vmem [#allocation6], %s1048_s12 }
  0x57   : > { %1333 = dma.done.wait (%p1865_p3), %s282_s8, 3072  }
  0x58   : > { %1335 = vsyncadd (%p1865_p3), %s282_s8, 4294964224  ;;  %s835_s1 = sshll.u32 %s1619_s25, 5  ;;  %s292_s7 = scalar_lea.sflag [#allocation8], %s1619_s25 }
  0x59   : > { %s1631_s27 = scalar_lea.vmem [#allocation7], %s835_s1 }
  0x5a   : > { %1337 = dma.done.wait (%p1865_p3), %s292_s7, 512  }
  0x5b   : > { %1339 = vsyncadd (%p1865_p3), %s292_s7, 4294966784 }
  0x5c   : > { %301 = sfence }
  0x5d   : > { %s836_s11 = sshll.u32 %s1619_s25, 6  ;;  %s329_s26 = sand.u32 1, %s1354_s16  }
  0x5e   : > { %s1639_s18 = scalar_lea.vmem [#allocation9], %s836_s11  ;;  %s1643_s0 = scalar_lea.vmem [#allocation10], %s329_s26 }
  0x5f   : > { %p837_p6 = scmp.ne.s32.totalorder %s1374_s21, 0 }
  0x61   : > { %337 = sbr.rel (%p837_p6) target bundleno = 104 (0x68), region = 48 }
  0x66   : > { %v1403_v0 = vmov 0.0  }
  0x67   : > { %338 = vst [vmem:[%s1643_s0] sm:$0x1] %v1403_v0 }
  0x68 PF: > { %s339_s9 = sld [smem:[#allocation2]]  ;;  %v882_v1 = vld [vmem:[%s1623_s6] sm:$0xff]   ;;  %v1017_v2 = vld [vmem:[%s1623_s6 + $0x8] sm:$0xff]   ;;  %v1018_v3 = vld [vmem:[%s1623_s6 + $0x10] sm:$0xff]   ;;  %s880_s29 = sshll.u32 %s1374_s21, 5 }
  0x69   : > { %v1019_v4 = vld [vmem:[%s1623_s6 + $0x18] sm:$0xff]   ;;  %v1020_v5 = vld [vmem:[%s1623_s6 + $0x20] sm:$0xff]   ;;  %v883_v6 = vunpack.c.l.bf16 %v882_v1  ;;  %v884_v7 = vunpack.c.h.bf16 %v882_v1  ;;  %v1021_v8 = vld [vmem:[%s1623_s6 + $0x28] sm:$0xff]   ;;  %v887_v10 = vunpack.c.l.bf16 %v1017_v2  ;;  %v888_v11 = vunpack.c.h.bf16 %v1017_v2  ;;  %s1656_s17 = sld [smem:[#allocation2 + $0x1]]  ;;  %s647_s20 = sadd.s32 %s1378_s22, %s880_s29 }
  0x6a   : > { %v1022_v9 = vld [vmem:[%s1623_s6 + $0x30] sm:$0xff]   ;;  %v891_v12 = vunpack.c.l.bf16 %v1018_v3  ;;  %v892_v13 = vunpack.c.h.bf16 %v1018_v3  ;;  %v1023_v14 = vld [vmem:[%s1623_s6 + $0x38] sm:$0xff]   ;;  %v1024_v15 = vld [vmem:[%s1623_s6 + $0x40] sm:$0xff]   ;;  %v895_v16 = vunpack.c.l.bf16 %v1019_v4  ;;  %v896_v17 = vunpack.c.h.bf16 %v1019_v4  ;;  %s1669_s28 = sld [smem:[#allocation2 + $0x2]]  ;;  %s875_s21 = sshll.u32 %s647_s20, 2 }
  0x6b   : > { %v899_v18 = vunpack.c.l.bf16 %v1020_v5  ;;  %v900_v19 = vunpack.c.h.bf16 %v1020_v5  ;;  %v1025_v20 = vld [vmem:[%s1623_s6 + $0x48] sm:$0xff]   ;;  %v1026_v21 = vld [vmem:[%s1623_s6 + $0x50] sm:$0xff]   ;;  %v903_v22 = vunpack.c.l.bf16 %v1021_v8  ;;  %v904_v23 = vunpack.c.h.bf16 %v1021_v8  ;;  %v1027_v26 = vld [vmem:[%s1623_s6 + $0x58] sm:$0xff]   ;;  %s649_s14 = scalar_lea.hbm %s1823_s3, %s875_s21  ;;  %s650_s5 = sshll.u32 %s1639_s18, 4  ;;  %s1743_s5 = int_to_ptr.vmem [resolvable:$true] %s650_s5 }
  0x6c   : > { %v907_v24 = vunpack.c.l.bf16 %v1022_v9  ;;  %v908_v27 = vunpack.c.h.bf16 %v1022_v9  ;;  %v911_v28 = vunpack.c.l.bf16 %v1023_v14  ;;  %v912_v29 = vunpack.c.h.bf16 %v1023_v14  ;;  %v1028_v47 = vld [vmem:[%s1623_s6 + $0x60] sm:$0xff]   ;;  %v1029_v48 = vld [vmem:[%s1623_s6 + $0x68] sm:$0xff]   ;;  %v1030_v53 = vld [vmem:[%s1623_s6 + $0x70] sm:$0xff]   ;;  %s652_s13 = sshll.u32 %s649_s14, 4  ;;  %s632_s12 = scalar_lea.sflag [#allocation4], %s1619_s25  ;;  %s653_s13 = int_to_ptr.hbm [resolvable:$true] %s652_s13 }
  0x6d   : > { %v915_v30 = vunpack.c.l.bf16 %v1024_v15  ;;  %v916_v31 = vunpack.c.h.bf16 %v1024_v15  ;;  %v919_v32 = vunpack.c.l.bf16 %v1025_v20  ;;  %v920_v33 = vunpack.c.h.bf16 %v1025_v20  ;;  %v1031_v54 = vld [vmem:[%s1623_s6 + $0x78] sm:$0xff]   ;;  %v1667_v59 = vld [vmem:[%s1623_s6 + $0x80] sm:$0xff]   ;;  %s1242_s8 = sshra.s32 %s653_s13, 4  ;;  %p1866_p12 = scmp.ne.s32.totalorder %s1852_s10, 0  ;;  %s1243_s8 = int_to_ptr.hbm [resolvable:$true] %s1242_s8 }
  0x6e   : > { %v372_v25 = vstv %s339_s9  ;;  %v923_v34 = vunpack.c.l.bf16 %v1026_v21  ;;  %v924_v37 = vunpack.c.h.bf16 %v1026_v21  ;;  %v927_v38 = vunpack.c.l.bf16 %v1027_v26  ;;  %p1249_p4 = scmp.lt.s32.totalorder %s1243_s8, %s1823_s3 }
  0x6f   : > { %v373_v35 = vmul.f32 %v883_v6, %v372_v25  ;;  %v374_v36 = vmul.f32 %v884_v7, %v372_v25  ;;  %v375_v39 = vmul.f32 %v887_v10, %v372_v25  ;;  %v376_v40 = vmul.f32 %v888_v11, %v372_v25 }
  0x70   : > { %v377_v41 = vmul.f32 %v891_v12, %v372_v25  ;;  %v378_v42 = vmul.f32 %v892_v13, %v372_v25  ;;  %v379_v43 = vmul.f32 %v895_v16, %v372_v25  ;;  %v380_v44 = vmul.f32 %v896_v17, %v372_v25 }
  0x71   : > { %v381_v45 = vmul.f32 %v899_v18, %v372_v25  ;;  %v382_v46 = vmul.f32 %v900_v19, %v372_v25  ;;  %v383_v49 = vmul.f32 %v903_v22, %v372_v25  ;;  %v384_v50 = vmul.f32 %v904_v23, %v372_v25 }
  0x72   : > { %v385_v51 = vmul.f32 %v907_v24, %v372_v25  ;;  %v386_v52 = vmul.f32 %v908_v27, %v372_v25  ;;  %v387_v55 = vmul.f32 %v911_v28, %v372_v25  ;;  %v388_v56 = vmul.f32 %v912_v29, %v372_v25  ;;  %v1033_v28 = vld [vmem:[%s1623_s6 + $0x88] sm:$0xff]  }
  0x73   : > { %v928_v57 = vunpack.c.h.bf16 %v1027_v26  ;;  %v423_v58 = vstv %s1656_s17  ;;  %v931_v60 = vunpack.c.l.bf16 %v1028_v47  ;;  %v932_v61 = vunpack.c.h.bf16 %v1028_v47 }
  0x74   : > { %v935_v62 = vunpack.c.l.bf16 %v1029_v48  ;;  %v936_v63 = vunpack.c.h.bf16 %v1029_v48  ;;  %v939_v0 = vunpack.c.l.bf16 %v1030_v53  ;;  %v940_v1 = vunpack.c.h.bf16 %v1030_v53 }
  0x75   : > { %v943_v2 = vunpack.c.l.bf16 %v1031_v54  ;;  %v944_v3 = vunpack.c.h.bf16 %v1031_v54  ;;  %v424_v4 = vmul.f32 %v915_v30, %v423_v58  ;;  %v425_v5 = vmul.f32 %v916_v31, %v423_v58  ;;  %v1039_v54 = vld [vmem:[%s1623_s6 + $0xb8] sm:$0xff]  }
  0x76   : > { %v947_v6 = vunpack.c.l.bf16 %v1667_v59  ;;  %v948_v7 = vunpack.c.h.bf16 %v1667_v59  ;;  %v426_v8 = vmul.f32 %v919_v32, %v423_v58  ;;  %v427_v9 = vmul.f32 %v920_v33, %v423_v58  ;;  %v1034_v33 = vld [vmem:[%s1623_s6 + $0x90] sm:$0xff]  }
  0x77   : > { %v428_v10 = vmul.f32 %v923_v34, %v423_v58  ;;  %v429_v11 = vmul.f32 %v924_v37, %v423_v58  ;;  %v430_v12 = vmul.f32 %v927_v38, %v423_v58  ;;  %v431_v13 = vmul.f32 %v928_v57, %v423_v58  ;;  %v1035_v34 = vld [vmem:[%s1623_s6 + $0x98] sm:$0xff]   ;;  %v1036_v38 = vld [vmem:[%s1623_s6 + $0xa0] sm:$0xff]  }
  0x78   : > { %v432_v14 = vmul.f32 %v931_v60, %v423_v58  ;;  %v433_v15 = vmul.f32 %v932_v61, %v423_v58  ;;  %v434_v16 = vmul.f32 %v935_v62, %v423_v58  ;;  %v435_v17 = vmul.f32 %v936_v63, %v423_v58 }
  0x79   : > { %v436_v18 = vmul.f32 %v939_v0, %v423_v58  ;;  %v437_v19 = vmul.f32 %v940_v1, %v423_v58  ;;  %v438_v20 = vmul.f32 %v943_v2, %v423_v58  ;;  %v439_v21 = vmul.f32 %v944_v3, %v423_v58 }
  0x7a   : > { %v440_v22 = vadd.f32 %v424_v4, %v373_v35  ;;  %v441_v23 = vadd.f32 %v425_v5, %v374_v36  ;;  %v442_v24 = vadd.f32 %v426_v8, %v375_v39  ;;  %v443_v25 = vadd.f32 %v427_v9, %v376_v40  ;;  %v523_v40 = vld [vmem:[%s1631_s27] sm:$0xff]  ;;  %v524_v4 = vld [vmem:[%s1631_s27 + $0x8] sm:$0xff] }
  0x7b   : > { %v1673_v26 = vadd.f32 %v428_v10, %v377_v41  ;;  %v1675_v27 = vadd.f32 %v429_v11, %v378_v42  ;;  %v1678_v29 = vadd.f32 %v430_v12, %v379_v43  ;;  %v1680_v30 = vadd.f32 %v431_v13, %v380_v44 }
  0x7c   : > { %v1682_v31 = vadd.f32 %v432_v14, %v381_v45  ;;  %v1684_v32 = vadd.f32 %v433_v15, %v382_v46  ;;  %v1688_v35 = vadd.f32 %v434_v16, %v383_v49  ;;  %v1690_v36 = vadd.f32 %v435_v17, %v384_v50  ;;  %v1037_v45 = vld [vmem:[%s1623_s6 + $0xa8] sm:$0xff]   ;;  %v1038_v50 = vld [vmem:[%s1623_s6 + $0xb0] sm:$0xff]   ;;  %s1244_s6 = scalar_lea.hbm %s1243_s8, 64 }
  0x7d   : > { %v1692_v37 = vadd.f32 %v436_v18, %v385_v51  ;;  %v490_v39 = vstv %s1669_s28  ;;  %v1697_v41 = vadd.f32 %v437_v19, %v386_v52  ;;  %v1699_v42 = vadd.f32 %v438_v20, %v387_v55  ;;  %p1245_p9 = scmp.ne.s32.totalorder %s1243_s8, %s1244_s6 }
  0x7e   : > { %v1701_v43 = vadd.f32 %v439_v21, %v388_v56  ;;  %v951_v44 = vunpack.c.l.bf16 %v1033_v28  ;;  %v952_v46 = vunpack.c.h.bf16 %v1033_v28  ;;  %v955_v47 = vunpack.c.l.bf16 %v1034_v33 }
  0x7f   : > { %v956_v48 = vunpack.c.h.bf16 %v1034_v33  ;;  %v959_v49 = vunpack.c.l.bf16 %v1035_v34  ;;  %v960_v53 = vunpack.c.h.bf16 %v1035_v34  ;;  %v963_v51 = vunpack.c.l.bf16 %v1036_v38  ;;  %p1246_p0 = pnand %p1245_p9, %p1866_p12 }
  0x80   : > { %v491_v57 = vmul.f32 %v947_v6, %v490_v39  ;;  %v527_v58 = vunpack.c.0.s8 %v523_v40  ;;  %v964_v59 = vunpack.c.h.bf16 %v1036_v38  ;;  %v967_v52 = vunpack.c.l.bf16 %v1037_v45 }
  0x81   : > { %v492_v60 = vmul.f32 %v948_v7, %v490_v39  ;;  %v528_v55 = vunpack.c.1.s8 %v523_v40  ;;  %v968_v61 = vunpack.c.h.bf16 %v1037_v45  ;;  %v971_v56 = vunpack.c.l.bf16 %v1038_v50  ;;  %p1247_p2 = pneg %p1246_p0 }
  0x82   : > { %v493_v62 = vmul.f32 %v951_v44, %v490_v39  ;;  %v529_v63 = vunpack.c.2.s8 %v523_v40  ;;  %v972_v0 = vunpack.c.h.bf16 %v1038_v50  ;;  %v975_v1 = vunpack.c.l.bf16 %v1039_v54  ;;  %v525_v44 = vld [vmem:[%s1631_s27 + $0x10] sm:$0xff] }
  0x83   : > { %v976_v2 = vunpack.c.h.bf16 %v1039_v54  ;;  %v494_v3 = vmul.f32 %v952_v46, %v490_v39  ;;  %v495_v5 = vmul.f32 %v955_v47, %v490_v39  ;;  %v507_v8 = vadd.f32 %v491_v57, %v440_v22 }
  0x84   : > { %v530_v9 = vunpack.c.3.s8 %v523_v40  ;;  %v543_v10 = vcvt.s32.f32 %v527_v58  ;;  %v496_v11 = vmul.f32 %v956_v48, %v490_v39  ;;  %v497_v6 = vmul.f32 %v959_v49, %v490_v39 }
  0x85   : > { %v508_v12 = vadd.f32 %v492_v60, %v441_v23  ;;  %v544_v13 = vcvt.s32.f32 %v528_v55  ;;  %v498_v14 = vmul.f32 %v960_v53, %v490_v39  ;;  %v509_v7 = vadd.f32 %v493_v62, %v442_v24  ;;  %v526_v53 = vld [vmem:[%s1631_s27 + $0x18] sm:$0xff]  ;;  %s1248_s27 = scalar_lea.hbm %s1823_s3, 256 }
  0x86   : > { %v531_v15 = vunpack.c.0.s8 %v524_v4  ;;  %v545_v16 = vcvt.s32.f32 %v529_v63  ;;  %v499_v17 = vmul.f32 %v963_v51, %v490_v39  ;;  %v500_v18 = vmul.f32 %v964_v59, %v490_v39  ;;  %p1250_p5 = scmp.lt.s32.totalorder %s1248_s27, %s1244_s6 }
  0x87   : > { %v501_v19 = vmul.f32 %v967_v52, %v490_v39  ;;  %v502_v20 = vmul.f32 %v968_v61, %v490_v39  ;;  %v510_v21 = vadd.f32 %v494_v3, %v443_v25  ;;  %v532_v28 = vunpack.c.1.s8 %v524_v4 }
  0x88   : > { %v546_v33 = vcvt.s32.f32 %v530_v9  ;;  %v1707_v22 = vmul.f32 %v543_v10, %v507_v8  ;;  %v503_v34 = vmul.f32 %v971_v56, %v490_v39  ;;  %v504_v38 = vmul.f32 %v972_v0, %v490_v39  ;;  %p1251_p7 = por %p1250_p5, %p1249_p4 }
  0x89   : > { %v505_v40 = vmul.f32 %v975_v1, %v490_v39  ;;  %v1709_v23 = vmul.f32 %v544_v13, %v508_v12  ;;  %v511_v24 = vadd.f32 %v495_v5, %v1673_v26  ;;  %v533_v45 = vunpack.c.2.s8 %v524_v4 }
  0x8a   : > { %v547_v46 = vcvt.s32.f32 %v531_v15  ;;  %v1713_v47 = vmul.f32 %v545_v16, %v509_v7  ;;  %v506_v48 = vmul.f32 %v976_v2, %v490_v39  ;;  %v512_v25 = vadd.f32 %v496_v11, %v1675_v27  ;;  %p1252_p11 = pnand %p1251_p7, %p1247_p2 }
  0x8b   : > { %v513_v49 = vadd.f32 %v497_v6, %v1678_v29  ;;  %v514_v50 = vadd.f32 %v498_v14, %v1680_v30  ;;  %v534_v51 = vunpack.c.3.s8 %v524_v4  ;;  %v548_v54 = vcvt.s32.f32 %v532_v28 }
  0x8c   : > { %v562_v57 = vmul.f32 %v546_v33, %v510_v21  ;;  %v576_v26 = vadd.f32 %v1709_v23, %v1707_v22  ;;  %v515_v58 = vadd.f32 %v499_v17, %v1682_v31  ;;  %v516_v59 = vadd.f32 %v500_v18, %v1684_v32 }
  0x8d   : > { %v535_v52 = vunpack.c.0.s8 %v525_v44  ;;  %v536_v39 = vunpack.c.1.s8 %v525_v44  ;;  %v517_v27 = vadd.f32 %v501_v19, %v1688_v35  ;;  %v549_v29 = vcvt.s32.f32 %v533_v45 }
  0x8e   : > { %v563_v60 = vmul.f32 %v547_v46, %v511_v24  ;;  %v577_v30 = vadd.f32 %v576_v26, %v1713_v47  ;;  %v518_v55 = vadd.f32 %v502_v20, %v1690_v36  ;;  %v537_v61 = vunpack.c.2.s8 %v525_v44 }
  0x8f   : > { %v538_v56 = vunpack.c.3.s8 %v525_v44  ;;  %v539_v62 = vunpack.c.0.s8 %v526_v53  ;;  %v540_v63 = vunpack.c.1.s8 %v526_v53  ;;  %v550_v0 = vcvt.s32.f32 %v534_v51 }
  0x90   : > { %v564_v31 = vmul.f32 %v548_v54, %v512_v25  ;;  %v578_v1 = vadd.f32 %v577_v30, %v562_v57  ;;  %v541_v32 = vunpack.c.2.s8 %v526_v53  ;;  %v542_v2 = vunpack.c.3.s8 %v526_v53 }
  0x91   : > { %v551_v3 = vcvt.s32.f32 %v535_v52  ;;  %v552_v4 = vcvt.s32.f32 %v536_v39  ;;  %v519_v35 = vadd.f32 %v503_v34, %v1692_v37  ;;  %v520_v5 = vadd.f32 %v504_v38, %v1697_v41 }
  0x92   : > { %v565_v8 = vmul.f32 %v549_v29, %v513_v49  ;;  %v579_v9 = vadd.f32 %v578_v1, %v563_v60  ;;  %v521_v36 = vadd.f32 %v505_v40, %v1699_v42  ;;  %v522_v10 = vadd.f32 %v506_v48, %v1701_v43 }
  0x93   : > { %v553_v11 = vcvt.s32.f32 %v537_v61  ;;  %v554_v6 = vcvt.s32.f32 %v538_v56  ;;  %v555_v12 = vcvt.s32.f32 %v539_v62  ;;  %v556_v13 = vcvt.s32.f32 %v540_v63 }
  0x94   : > { %v566_v14 = vmul.f32 %v550_v0, %v514_v50  ;;  %v580_v7 = vadd.f32 %v579_v9, %v564_v31  ;;  %v557_v15 = vcvt.s32.f32 %v541_v32  ;;  %v558_v16 = vcvt.s32.f32 %v542_v2 }
  0x95   : > { %v567_v37 = vmul.f32 %v551_v3, %v515_v58  ;;  %v568_v17 = vmul.f32 %v552_v4, %v516_v59  ;;  %v980_v42 = vpack.c.bf16 %v1709_v23, %v1707_v22  ;;  %v985_v43 = vpack.c.bf16 %v562_v57, %v1713_v47 }
  0x96   : > { %v581_v41 = vadd.f32 %v580_v7, %v565_v8  ;;  %v990_v18 = vpack.c.bf16 %v564_v31, %v563_v60  ;;  %v569_v19 = vmul.f32 %v553_v11, %v517_v27  ;;  %v570_v20 = vmul.f32 %v554_v6, %v518_v55 }
  0x97   : > { %v995_v21 = vpack.c.bf16 %v566_v14, %v565_v8  ;;  %v571_v28 = vmul.f32 %v555_v12, %v519_v35  ;;  %v572_v33 = vmul.f32 %v556_v13, %v520_v5  ;;  %981 = vst [vmem:[%s1639_s18] sm:$0xff] %v980_v42   ;;  %v1000_v38 = vpack.c.bf16 %v568_v17, %v567_v37 }
  0x98   : > { %v582_v34 = vadd.f32 %v581_v41, %v566_v14  ;;  %v573_v22 = vmul.f32 %v557_v15, %v521_v36  ;;  %v574_v40 = vmul.f32 %v558_v16, %v522_v10  ;;  %1040 = vst [vmem:[%s1639_s18 + $0x8] sm:$0xff] %v985_v43   ;;  %v1005_v23 = vpack.c.bf16 %v570_v20, %v569_v19 }
  0x99   : > { %1041 = vst [vmem:[%s1639_s18 + $0x10] sm:$0xff] %v990_v18   ;;  %v1010_v44 = vpack.c.bf16 %v572_v33, %v571_v28 }
  0x9a   : > { %v583_v24 = vadd.f32 %v582_v34, %v567_v37  ;;  %1042 = vst [vmem:[%s1639_s18 + $0x18] sm:$0xff] %v995_v21   ;;  %v1015_v45 = vpack.c.bf16 %v574_v40, %v573_v22 }
  0x9b   : > { %1043 = vst [vmem:[%s1639_s18 + $0x20] sm:$0xff] %v1000_v38  }
  0x9c   : > { %v584_v46 = vadd.f32 %v583_v24, %v568_v17  ;;  %1044 = vst [vmem:[%s1639_s18 + $0x28] sm:$0xff] %v1005_v23  }
  0x9d   : > { %1045 = vst [vmem:[%s1639_s18 + $0x30] sm:$0xff] %v1010_v44  }
  0x9e   : > { %v585_v47 = vadd.f32 %v584_v46, %v569_v19  ;;  %1046 = vst [vmem:[%s1639_s18 + $0x38] sm:$0xff] %v1015_v45  }
  0xa0   : > { %v586_v48 = vadd.f32 %v585_v47, %v570_v20 }
  0xa1   : > { %1255 = shalt.err (!%p1252_p11)
}
  0xa2   : > { %s1404_s25 = smov 64   ;;  %s1405_s18 = smov 128   ;;  %v587_v25 = vadd.f32 %v586_v48, %v571_v28  ;;  %v575_v59 = vld [vmem:[%s1643_s0] sm:$0x1] }
  0xa3   : > { %s1406_s17 = smov 4   ;;  %s664_s21 = scalar_lea.hbm %s1824_s4, %s1378_s22 }
  0xa4   : > { %1064 = dma.vmem_to_hbm [thread:$0]  (%p1866_p12), %s1743_s5, 1024, %s653_s13, %s632_s12, %s1404_s25, %s1405_s18, %s1406_s17   ;;  %v588_v49 = vadd.f32 %v587_v25, %v572_v33 }
  0xa5   : > { %s666_s30 = sshll.u32 %s1643_s0, 4  ;;  %s668_s10 = sshll.u32 %s664_s21, 4  ;;  %s667_s30 = int_to_ptr.vmem [resolvable:$true] %s666_s30  ;;  %s669_s10 = int_to_ptr.hbm [resolvable:$true] %s668_s10 }
  0xa6   : > { %v589_v50 = vadd.f32 %v588_v49, %v573_v22  ;;  %s637_s15 = scalar_lea.sflag [#allocation11], %s329_s26  ;;  %s1270_s14 = sshra.s32 %s669_s10, 4  ;;  %s1271_s14 = int_to_ptr.hbm [resolvable:$true] %s1270_s14 }
  0xa7   : > { %s1272_s5 = scalar_lea.hbm %s1271_s14, 1  ;;  %s1276_s12 = scalar_lea.hbm %s1824_s4, 2 }
  0xa8   : > { %v590_v53 = vadd.f32 %v589_v50, %v574_v40  ;;  %p1273_p10 = scmp.ne.s32.totalorder %s1271_s14, %s1272_s5  ;;  %p1277_p9 = scmp.lt.s32.totalorder %s1271_s14, %s1824_s4 }
  0xa9   : > { %p1278_p12 = scmp.lt.s32.totalorder %s1276_s12, %s1272_s5 }
  0xaa   : > { %v591_v51 = vrot.slane %v590_v53, 4  ;;  %p1274_p3 = pnand %p1273_p10, %p1551_p1 }
  0xab   : > { %p1279_p0 = por %p1278_p12, %p1277_p9 }
  0xac   : > { %v592_v54 = vadd.f32 %v591_v51, %v590_v53  ;;  %p1275_p6 = pneg %p1274_p3 }
  0xae   : > { %v593_v57 = vrot.slane %v592_v54, 2  ;;  %p1280_p2 = pnand %p1279_p0, %p1275_p6 }
  0xb0   : > { %v594_v26 = vadd.f32 %v593_v57, %v592_v54 }
  0xb2   : > { %v595_v58 = vrot.slane %v594_v26, 1 }
  0xb4   : > { %v596_v52 = vadd.f32 %v595_v58, %v594_v26 }
  0xb6   : > { %v597_v39 = vadd.f32 %v596_v52, %v575_v59 }
  0xb8   : > { %598 = vst [vmem:[%s1643_s0] sm:$0x1] %v597_v39 }
  0xb9   : > { %1283 = shalt.err (!%p1280_p2)
}
  0xba   : > { %1065 = dma.vmem_to_hbm [thread:$0]  (%p1551_p1), %s667_s30, 16, %s669_s10, %s637_s15  }
  0xbb PF: > { %s1868_s26 = sld [smem:[#allocation24_spill]] }
  0xbc   : > { %s1869_s0 = sld [smem:[#allocation22_spill]] }
  0xc1   : > { %p1081_p4 = scmp.ge.s32.totalorder %s1868_s26, 2 }
  0xc2   : > { %s680_s7 = sand.u32 1, %s1869_s0  }
  0xc3   : > { %p1073_p5 = pnand %p1081_p4, %p1536_p13  ;;  %s681_s27 = scalar_lea.sflag [#allocation4], %s680_s7 }
  0xc5   : > { %p1074_p7 = pneg %p1073_p5 }
  0xc7   : > { %1341 = dma.done.wait (%p1074_p7), %s681_s27, 1024  }
  0xc8   : > { %1343 = vsyncadd (%p1074_p7), %s681_s27, 4294966272  ;;  %s1871_s11 = sld [smem:[#allocation20_spill]]  ;;  %p1076_p11 = pnand %p1081_p4, %p1561_p8 }
  0xca   : > { %p1077_p10 = pneg %p1076_p11 }
  0xce   : > { %s690_s25 = sand.u32 1, %s1871_s11  }
  0xcf   : > { %s691_s18 = scalar_lea.sflag [#allocation11], %s690_s25 }
  0xd0   : > { %1345 = dma.done.wait (%p1077_p10), %s691_s18, 16  }
  0xd1   : > { %1347 = vsyncadd (%p1077_p10), %s691_s18, 4294967280  ;;  %s28_s25 = sadd.s32 1, %s1868_s26   ;;  %s1873_s17 = sld [smem:[#allocation21_spill]] }
  0xd2   : > { %p25_p1 = scmp.ge.s32.totalorder %s28_s25, 6   ;;  %s1874_s28 = sld [smem:[#allocation29_spill]] }
  0xd3   : > { %s1875_s29 = sld [smem:[#allocation23_spill]]  ;;  %s1879_s15 = smov %s1354_s16 }
  0xd4   : > { %s1876_s20 = sld [smem:[#allocation28_spill]]  ;;  %s1882_s18 = smov %s1366_s19 }
  0xd5   : > { %s1877_s30 = sld [smem:[#allocation25_spill]]  ;;  %s1884_s21 = smov %s1382_s23 }
  0xd6   : > { %s1878_s10 = sld [smem:[#allocation26_spill]]  ;;  %s1885_s22 = smov %s1386_s24 }
  0xd7   : > { %s1880_s16 = smov %s1873_s17 }
  0xd8   : > { %s1881_s17 = smov %s1874_s28  ;;  %27 = sbr.rel (!%p25_p1) target bundleno = 17 (0x11), region = 123 }
  0xd9   : > { %s1883_s19 = smov %s1875_s29 }
  0xdb   : > { %s1886_s23 = smov %s1877_s30 }
  0xdc   : > { %s1887_s24 = smov %s1878_s10 }
  0xdd   :  { %696 = vsyncpa [#allocation3], 1 }
  0xde   :  { %698 = vsyncpa [#allocation3 + $0x1], 1 }
  0xdf   :  { %699 = vsyncpa [#allocation8], 1 }
  0xe0   :  { %701 = vsyncpa [#allocation8 + $0x1], 1 }
  0xe1   :  { %702 = vsyncpa [#allocation4], 1 }
  0xe2   :  { %704 = vsyncpa [#allocation4 + $0x1], 1 }
  0xe3   :  { %705 = vsyncpa [#allocation11], 1 }
  0xe4   :  { %707 = vsyncpa [#allocation11 + $0x1], 1 }
  0xe5   :  { %708 = vsyncpa [#allocation5], 1 }
  0xe6   :  { %710 = vsyncpa [#allocation5 + $0x1], 1 }

</bundles_post_ra>
